<compile_context>
chip_gen: v6e
topology: v6e:2x2x1
jax: 0.10.0
libtpu: 0.0.40
codegen_flags: <defaults>
</compile_context>

<pallas_src>
import functools

import jax
import jax.numpy as jnp
import numpy as np
from jax.experimental import pallas as pl
from jax.experimental.pallas import tpu as pltpu


def _round_up(x, m):
    return ((x + m - 1) // m) * m


# --------------------------------------------------------------------------
# Generation-aware knobs (v5e / v6e / v7x)
# --------------------------------------------------------------------------
@functools.lru_cache(maxsize=None)
def _device_kind():
    try:
        return jax.devices()[0].device_kind.lower()
    except Exception:
        return ""


@functools.lru_cache(maxsize=None)
def _num_tensorcores():
    # v7x has 2 TensorCores per chip; v5e/v6e have 1.
    return 2 if "v7" in _device_kind() else 1


@functools.lru_cache(maxsize=None)
def _vmem_limit_bytes():
    try:
        cap = int(pltpu.get_tpu_info().vmem_capacity_bytes)
    except Exception:
        cap = (64 << 20) if _num_tensorcores() >= 2 else (128 << 20)
    # Leave ~16 MiB headroom for compiler-internal scratch / semaphores /
    # double-buffer bookkeeping: ~48 MiB on v7x (64 MiB phys), ~112 MiB on v5e/v6e.
    return max(cap - (16 << 20), cap // 2)


def _compiler_params(semantics):
    return pltpu.CompilerParams(dimension_semantics=semantics,
                                vmem_limit_bytes=_vmem_limit_bytes())


_TILE_BUDGET = 8 << 20   # per-buffer tile budget (Pallas double-buffers inputs)


# --------------------------------------------------------------------------
# Pallas kernels: pooling + LinearHead (half precision)
# --------------------------------------------------------------------------
def _head_first_kernel(reps_ref, w_ref, b_ref, out_ref):
    # reps_ref: (tb, H) bf16  -- hidden[:, 0, :] already sliced in the wrapper
    # w_ref:    (H, OP) bf16  -- head weight, columns zero-padded to 128 lanes
    # b_ref:    (1, OP) bf16
    scores = jnp.dot(reps_ref[...], w_ref[...],
                     preferred_element_type=jnp.float32)            # (tb, OP) f32
    out_ref[...] = (scores + b_ref[...].astype(jnp.float32)).astype(out_ref.dtype)


def _head_mean_kernel(hidden_ref, mask_ref, w_ref, b_ref, out_ref, acc_ref, den_ref):
    # Grid: (batch tiles [parallel], seq tiles [arbitrary/reduction]).
    # hidden_ref: (tb, ts, H) bf16   mask_ref: (tb, Sp) bf16 (full padded seq)
    # acc_ref:    (tb, H) f32 scratch    den_ref: (tb, 1) f32 scratch
    s = pl.program_id(1)
    ts = hidden_ref.shape[1]

    @pl.when(s == 0)
    def _init():
        acc_ref[...] = jnp.zeros_like(acc_ref)
        den_ref[...] = jnp.sum(mask_ref[...].astype(jnp.float32),
                               axis=1, keepdims=True)

    if ts == mask_ref.shape[1]:          # single seq step: use the whole mask
        m = mask_ref[...]
    else:                                # seq-tiled: slice the current window
        start = pl.multiple_of(s * ts, ts)
        m = mask_ref[:, pl.ds(start, ts)]

    # Masked seq-sum on the VPU (bf16 multiply with a 0/1 mask is exact),
    # accumulated in f32.  This replaces the M=1 batched einsum that serialized
    # tiny matmuls through the MXU result FIFO.
    # TODO(synk): on v5e (no bf16 VPU) an MXU "project-first" variant
    # ((tb*ts, H) @ (H, OP)) would give better slot balance; omitted here to
    # keep the kernel reshape-free and identical across generations.
    acc_ref[...] += jnp.sum((hidden_ref[...] * m[:, :, None]).astype(jnp.float32),
                            axis=1)

    @pl.when(s == pl.num_programs(1) - 1)
    def _fin():
        reps = (acc_ref[...] / jnp.maximum(den_ref[...], 1e-9)).astype(jnp.bfloat16)
        scores = jnp.dot(reps, w_ref[...], preferred_element_type=jnp.float32)
        out_ref[...] = (scores + b_ref[...].astype(jnp.float32)).astype(out_ref.dtype)


# --------------------------------------------------------------------------
# Wrappers: tiling + pallas_call
# --------------------------------------------------------------------------
def _prep_head(head_w, head_b):
    head_w = head_w.astype(jnp.bfloat16)
    head_b = jnp.reshape(head_b, (1, -1)).astype(jnp.bfloat16)
    o = head_w.shape[1]
    op = _round_up(o, 128)                 # lane-dense output stores
    if op != o:
        head_w = jnp.pad(head_w, ((0, 0), (0, op - o)))
        head_b = jnp.pad(head_b, ((0, 0), (0, op - o)))
    return head_w, head_b, op, o


def _pick_batch_tile(bp0, rows_per_budget, cap):
    # Batch tiles are multiples of 16 (bf16 packs 16 rows per sublane group).
    tb = max(16, min(cap, (rows_per_budget // 16) * 16, bp0))
    # v7x: ensure the parallel batch axis has >= 2 grid steps so both
    # TensorCores get work (no-op on single-TC v5e/v6e).
    if _num_tensorcores() >= 2 and tb >= bp0 and bp0 >= 32:
        tb = _round_up(-(-bp0 // 2), 16)
    return tb


def linear_head_scores(reps, head_w, head_b):
    """LinearHead on pooled reps.  reps: (B, H).  Returns (B, O) bf16."""
    B, H = reps.shape
    head_w, head_b, op, o = _prep_head(head_w, head_b)
    reps = reps.astype(jnp.bfloat16)

    bp0 = _round_up(B, 16)
    tb = _pick_batch_tile(bp0, _TILE_BUDGET // (H * 2), cap=2048)
    bp = _round_up(B, tb)
    if bp != B:
        reps = jnp.pad(reps, ((0, bp - B), (0, 0)))

    out = pl.pallas_call(
        _head_first_kernel,
        out_shape=jax.ShapeDtypeStruct((bp, op), jnp.bfloat16),
        grid=(bp // tb,),
        in_specs=[
            pl.BlockSpec((tb, H), lambda i: (i, 0)),
            pl.BlockSpec((H, op), lambda i: (0, 0)),
            pl.BlockSpec((1, op), lambda i: (0, 0)),
        ],
        out_specs=pl.BlockSpec((tb, op), lambda i: (i, 0)),
        compiler_params=_compiler_params(("parallel",)),
    )(reps, head_w, head_b)
    return out[:B, :o]


def mean_pool_head_scores(hidden, attention_mask, head_w, head_b):
    """Masked mean-pool over seq then LinearHead.  hidden: (B, S, H)."""
    B, S, H = hidden.shape
    head_w, head_b, op, o = _prep_head(head_w, head_b)
    hidden = hidden.astype(jnp.bfloat16)
    mask = attention_mask.astype(jnp.bfloat16)

    bp0 = _round_up(B, 16)
    row_bytes = S * H * 2
    if 16 * row_bytes <= _TILE_BUDGET:
        ts = S                                            # no seq tiling needed
        tb = _pick_batch_tile(bp0, _TILE_BUDGET // row_bytes, cap=1024)
    else:
        # Large S*H: tile the sequence (reduction axis) so the hidden block
        # stays within budget even at the minimum 16-row batch tile.
        tb = 16
        ts_cap = max(128, (_TILE_BUDGET // (tb * H * 2)) // 128 * 128)
        ts = 0
        d = ts_cap
        while d >= 128:                  # prefer a 128-multiple divisor (no padding)
            if S % d == 0:
                ts = d
                break
            d -= 128
        if ts == 0:
            ts = min(ts_cap, _round_up(S, 128))

    sp = _round_up(S, ts)
    bp = _round_up(B, tb)
    if bp != B or sp != S:
        hidden = jnp.pad(hidden, ((0, bp - B), (0, sp - S), (0, 0)))
        mask = jnp.pad(mask, ((0, bp - B), (0, sp - S)))

    out = pl.pallas_call(
        _head_mean_kernel,
        out_shape=jax.ShapeDtypeStruct((bp, op), jnp.bfloat16),
        grid=(bp // tb, sp // ts),
        in_specs=[
            pl.BlockSpec((tb, ts, H), lambda i, s: (i, s, 0)),
            pl.BlockSpec((tb, sp), lambda i, s: (i, 0)),   # full (padded) seq mask
            pl.BlockSpec((H, op), lambda i, s: (0, 0)),
            pl.BlockSpec((1, op), lambda i, s: (0, 0)),
        ],
        out_specs=pl.BlockSpec((tb, op), lambda i, s: (i, 0)),
        scratch_shapes=[
            pltpu.VMEM((tb, H), jnp.float32),   # running masked seq-sum
            pltpu.VMEM((tb, 1), jnp.float32),   # mask row count (denominator)
        ],
        compiler_params=_compiler_params(("parallel", "arbitrary")),
    )(hidden, mask, head_w, head_b)
    return out[:B, :o]


# --------------------------------------------------------------------------
# Plain-JAX glue: synthetic stand-in for the HF backbone lm_r
# --------------------------------------------------------------------------
def synthetic_backbone(input_ids, attention_mask, emb, w_enc, b_enc):
    # TODO(synk): self.lm_r is an arbitrary HuggingFace PreTrainedModel; it is
    # replaced here by a deterministic embedding + tanh projection producing
    # last_hidden_state.
    del attention_mask
    x = emb[input_ids]                              # (B, S, H)
    h = jnp.tanh(x @ w_enc + b_enc)                 # (B, S, H)
    # bf16 is the TPU-native half format (numerics differ slightly from torch fp16).
    return h.astype(jnp.bfloat16)


def rr_model_for_inference_forward(pos_pairs, neg_pairs, params, *, pooling="first"):
    """Mirrors RRModelForInference.forward: returns (pos_pair_scores, neg_pair_scores)."""
    def backbone(items):
        return synthetic_backbone(items["input_ids"], items["attention_mask"],
                                  params["emb"], params["w_enc"], params["b_enc"])

    if pos_pairs is None and neg_pairs is None:
        return None, None

    head_w, head_b = params["head_w"], params["head_b"]

    if pooling == "first":
        # Slice seq position 0 per batch BEFORE any concat: only (B, H) reps are
        # concatenated, never the full (B, S, H) activations.
        chunks, n_pos = [], 0
        if pos_pairs is not None:
            h = backbone(pos_pairs)
            chunks.append(h[:, 0, :])
            n_pos = h.shape[0]
        if neg_pairs is not None:
            chunks.append(backbone(neg_pairs)[:, 0, :])
        reps = chunks[0] if len(chunks) == 1 else jnp.concatenate(chunks, axis=0)
        scores = linear_head_scores(reps, head_w, head_b)
        if pos_pairs is not None and neg_pairs is not None:
            return scores[:n_pos], scores[n_pos:]
        return (scores, None) if pos_pairs is not None else (None, scores)

    if pooling == "mean":
        # One pallas_call per batch: no full (B_total, S, H) HBM concat copy.
        def score(items):
            if items is None:
                return None
            return mean_pool_head_scores(backbone(items), items["attention_mask"],
                                         head_w, head_b)
        return score(pos_pairs), score(neg_pairs)

    # TODO(synk): pooling='no' (return raw hidden) and the T5 decoder-logit
    # scoring branch are not implemented in this kernel.
    raise ValueError(f"Unknown pooling type: {pooling}")


# --------------------------------------------------------------------------
# Main
# --------------------------------------------------------------------------
if __name__ == "__main__":
    V, S, H, O = 64, 8, 32, 1        # vocab, seq, hidden (projection_in_dim), head out
    B_POS, B_NEG = 2, 4              # positive / negative pair batches

    key = jax.random.PRNGKey(0)
    k_emb, k_enc, k_head, k_pos, k_neg = jax.random.split(key, 5)

    params = {
        "emb": jax.random.normal(k_emb, (V, H), jnp.float32),
        "w_enc": jax.random.normal(k_enc, (H, H), jnp.float32) * 0.3,
        "b_enc": jnp.zeros((H,), jnp.float32),
        # LinearHead(H, 1), half precision (bf16 in place of torch .half()).
        "head_w": (jax.random.normal(k_head, (H, O), jnp.float32) * 0.3).astype(jnp.bfloat16),
        "head_b": jnp.zeros((1, O), jnp.bfloat16),
    }

    pos_pairs = {
        "input_ids": jax.random.randint(k_pos, (B_POS, S), 0, V, dtype=jnp.int32),
        "attention_mask": jnp.ones((B_POS, S), jnp.int32),
    }
    # Ragged mask on the negatives so mean pooling is genuinely exercised.
    neg_lens = jnp.array([S, S - 2, S - 5, 3], jnp.int32)
    neg_pairs = {
        "input_ids": jax.random.randint(k_neg, (B_NEG, S), 0, V, dtype=jnp.int32),
        "attention_mask": (jnp.arange(S)[None, :] < neg_lens[:, None]).astype(jnp.int32),
    }

    def ref_encode(items, pooling):
        h = synthetic_backbone(items["input_ids"], items["attention_mask"],
                               params["emb"], params["w_enc"],
                               params["b_enc"]).astype(jnp.float32)
        if pooling == "first":
            reps = h[:, 0, :]
        else:
            m = items["attention_mask"].astype(jnp.float32)
            reps = (h * m[:, :, None]).sum(axis=1) / jnp.maximum(
                m.sum(axis=1, keepdims=True), 1e-9)
        reps = reps.astype(jnp.bfloat16).astype(jnp.float32)
        w = params["head_w"].astype(jnp.float32)
        b = jnp.reshape(params["head_b"], (1, -1)).astype(jnp.float32)
        return np.asarray(reps @ w + b)

    for pooling in ("first", "mean"):
        pos_s, neg_s = rr_model_for_inference_forward(pos_pairs, neg_pairs, params,
                                                      pooling=pooling)
        jax.block_until_ready((pos_s, neg_s))
        assert pos_s.shape == (B_POS, O) and pos_s.dtype == jnp.bfloat16
        assert neg_s.shape == (B_NEG, O) and neg_s.dtype == jnp.bfloat16
        np.testing.assert_allclose(np.asarray(pos_s).astype(np.float32),
                                   ref_encode(pos_pairs, pooling),
                                   rtol=5e-2, atol=5e-2)
        np.testing.assert_allclose(np.asarray(neg_s).astype(np.float32),
                                   ref_encode(neg_pairs, pooling),
                                   rtol=5e-2, atol=5e-2)

    print("KERNEL_OK")
</pallas_src>

<mosaic_0001>
module attributes {stable_mosaic.version = 11 : i64} {
  func.func @_head_first_kernel(%arg0: i32, %arg1: memref<16x32xbf16, #tpu.memory_space<vmem>>, %arg2: memref<32x128xbf16, #tpu.memory_space<vmem>>, %arg3: memref<1x128xbf16, #tpu.memory_space<vmem>>, %arg4: memref<16x128xbf16, #tpu.memory_space<vmem>>) attributes {dimension_semantics = [#tpu.dimension_semantics<parallel>], iteration_bounds = array<i64: 1>, scalar_prefetch = 0 : i64, scratch_operands = 0 : i64, tpu.core_type = #tpu.core_type<tc>, window_params = [{transform_indices = @transform_0, window_bounds = array<i64: 16, 32>}, {pipeline_mode = #tpu.pipeline_mode<synchronous>, transform_indices = @transform_1, window_bounds = array<i64: 32, 128>}, {pipeline_mode = #tpu.pipeline_mode<synchronous>, transform_indices = @transform_2, window_bounds = array<i64: 1, 128>}, {transform_indices = @transform_3, window_bounds = array<i64: 16, 128>}]} {
    %c0 = arith.constant 0 : index
    %c0_0 = arith.constant 0 : index
    %0 = vector.load %arg1[%c0, %c0_0] : memref<16x32xbf16, #tpu.memory_space<vmem>>, vector<16x32xbf16>
    %c0_1 = arith.constant 0 : index
    %c0_2 = arith.constant 0 : index
    %1 = vector.load %arg2[%c0_1, %c0_2] : memref<32x128xbf16, #tpu.memory_space<vmem>>, vector<32x128xbf16>
    %cst = arith.constant dense<0.000000e+00> : vector<16x128xf32>
    %2 = tpu.matmul %0, %1, %cst {dimension_numbers = #tpu.dot_dimension_numbers<[1], [0], [0], [1], [0, 0, 1, 1], [], []>} : vector<16x32xbf16>, vector<32x128xbf16>, vector<16x128xf32> -> vector<16x128xf32>
    %c0_3 = arith.constant 0 : index
    %c0_4 = arith.constant 0 : index
    %3 = vector.load %arg3[%c0_3, %c0_4] : memref<1x128xbf16, #tpu.memory_space<vmem>>, vector<1x128xbf16>
    %4 = arith.extf %3 : vector<1x128xbf16> to vector<1x128xf32>
    %5 = vector.broadcast %4 : vector<1x128xf32> to vector<16x128xf32>
    %6 = arith.addf %2, %5 : vector<16x128xf32>
    %7 = arith.truncf %6 : vector<16x128xf32> to vector<16x128xbf16>
    %c0_5 = arith.constant 0 : index
    %c0_6 = arith.constant 0 : index
    %8 = vector.load %arg4[%c0_5, %c0_6] : memref<16x128xbf16, #tpu.memory_space<vmem>>, vector<16x128xbf16>
    tpu.vector_store %arg4[%c0_5, %c0_6], %7 {strides = array<i32>} : memref<16x128xbf16, #tpu.memory_space<vmem>>, vector<16x128xbf16>,
    return
  }
  func.func @transform_0(%arg0: i32) -> (i32, i32) {
    %c0_i32 = arith.constant 0 : i32
    %c0_i32_0 = arith.constant 0 : i32
    return %arg0, %c0_i32 : i32, i32
  }
  func.func @transform_1(%arg0: i32) -> (i32, i32) {
    %c0_i32 = arith.constant 0 : i32
    %c0_i32_0 = arith.constant 0 : i32
    %c0_i32_1 = arith.constant 0 : i32
    return %c0_i32, %c0_i32_0 : i32, i32
  }
  func.func @transform_2(%arg0: i32) -> (i32, i32) {
    %c0_i32 = arith.constant 0 : i32
    %c0_i32_0 = arith.constant 0 : i32
    %c0_i32_1 = arith.constant 0 : i32
    return %c0_i32, %c0_i32_0 : i32, i32
  }
  func.func @transform_3(%arg0: i32) -> (i32, i32) {
    %c0_i32 = arith.constant 0 : i32
    %c0_i32_0 = arith.constant 0 : i32
    return %arg0, %c0_i32 : i32, i32
  }
}

</mosaic_0001>

<bundles_post_ra>
// kernel: tpu_custom_call.1
= control target key start
LH: loop header
LB: loop body
LE: loop exit
PB: predicated region body
PF: predicated region fallthrough
CT: control target
= control target key end

     0   :  { %8 = vsyncpa [#allocation3], 0  ;;  %s294_s0 = inlined_call_operand.hbm [shape: bf16[16,32], index: 0, kind: input, shape index: {}]   ;;  %s295_s1 = inlined_call_operand.hbm [shape: bf16[32,128], index: 1, kind: input, shape index: {}]   ;;  %s296_s2 = inlined_call_operand.vmem [shape: bf16[1,128], index: 2, kind: input, shape index: {}]   ;;  %s297_s3 = inlined_call_operand.hbm [shape: bf16[16,128], index: 3, kind: output, shape index: {}]  }
   0x1   :  { %9 = vsyncpa [#allocation6], 0 }
   0x2   :  { %10 = vsyncpa [#allocation4], 0  ;;  %s246_s12 = smov [#allocation2]  }
   0x3   :  { %s16_s13 = sshll.u32 %s246_s12, 4  ;;  %s17_s13 = int_to_ptr.vmem [resolvable:$true] %s16_s13 }
   0x4   :  { %s188_s14 = scalar_lea.vmem %s17_s13, 128  ;;  %p193_p1 = scmp.lt.s32.totalorder %s17_s13, %s17_s13 }
   0x5   :  { %p189_p0 = scmp.ne.s32.totalorder %s17_s13, %s188_s14  ;;  %p194_p2 = scmp.lt.s32.totalorder %s188_s14, %s188_s14 }
   0x7   :  { %p195_p3 = por %p194_p2, %p193_p1 }
   0x9   :  { %p196_p4 = pnand %p195_p3, %p189_p0 }
   0xb   :  { %199 = shalt.err (!%p196_p4)
}
   0xc   :  { %s247_s15 = smov 64   ;;  %s248_s16 = smov 4  }
   0xd   :  { %22 = dma.hbm_to_vmem [thread:$0]  %s294_s0, 128, %s17_s13, [#allocation3], %s247_s15, %s247_s15, %s248_s16  }
   0xe   :  { %s249_s19 = smov [#allocation5]  }
   0xf   :  { %s28_s20 = sshll.u32 %s249_s19, 4  ;;  %s29_s20 = int_to_ptr.vmem [resolvable:$true] %s28_s20 }
  0x10   :  { %s208_s21 = scalar_lea.vmem %s29_s20, 256  ;;  %p213_p6 = scmp.lt.s32.totalorder %s29_s20, %s29_s20 }
  0x11   :  { %p209_p5 = scmp.ne.s32.totalorder %s29_s20, %s208_s21  ;;  %p214_p7 = scmp.lt.s32.totalorder %s208_s21, %s208_s21 }
  0x13   :  { %p215_p8 = por %p214_p7, %p213_p6 }
  0x15   :  { %p216_p9 = pnand %p215_p8, %p209_p5 }
  0x17   :  { %219 = shalt.err (!%p216_p9)
}
  0x18   :  { %34 = dma.hbm_to_vmem [thread:$0]  %s295_s1, 256, %s29_s20, [#allocation6], %s247_s15, %s247_s15, %s248_s16  }
  0x19   :  { %240 = dma.done.wait [#allocation3], 128  }
  0x1a   :  { %241 = vsyncadd [#allocation3], 4294967168 }
  0x1b   :  { %242 = dma.done.wait [#allocation6], 256  }
  0x1c   :  { %243 = vsyncadd [#allocation6], 4294967040  ;;  %v250_v0 = vmov 0.0   ;;  %vm251_vm0 = vmmov 0   ;;  %v177_v1 = vld [vmem:[#allocation5 + $0x8] sm:$0xff]   ;;  %v178_v2 = vld [vmem:[#allocation5] sm:$0xff]   ;;  %v52_v4 = vlaneseq }
  0x1d   :  { %162 = vmatprep.subr.bf16.mxu0 %v250_v0  ;;  %166 = vmatprep.mubr.msk.bf16.mxu0 %vm251_vm0, %v250_v0  ;;  %v179_v3 = vld [vmem:[#allocation2] sm:$0xff]   ;;  %vm73_vm1 = vcmask 261120   ;;  %s252_s24 = smov [#allocation7]  }
  0x1e   :  { %163 = vmatpush3.bf16.msra.mxu0 %v177_v1  ;;  %v53_v5 = vshrl.u32 %v52_v4, 7  ;;  %v50_v6 = vld [vmem:[%s296_s2] sm:$0x1]  ;;  %s133_s25 = sshll.u32 %s252_s24, 4  ;;  %s134_s25 = int_to_ptr.vmem [resolvable:$true] %s133_s25 }
  0x1f   :  { %164 = vmatprep.subr.bf16.mxu0 %v250_v0  ;;  %v51_v7 = vunpack.c.l.bf16 %v50_v6  ;;  %s220_s26 = scalar_lea.vmem %s134_s25, 128  ;;  %p225_p11 = scmp.lt.s32.totalorder %s134_s25, %s134_s25 }
  0x20   :  { %v54_v8 = vsub.s32 0, %v53_v5  ;;  %p221_p10 = scmp.ne.s32.totalorder %s134_s25, %s220_s26  ;;  %p226_p12 = scmp.lt.s32.totalorder %s220_s26, %s220_s26 }
  0x22   :  { %165 = vmatpush3.bf16.msra.mxu0 %v178_v2  ;;  %v55_v10 = vrot.slane %v51_v7, %v54_v8  ;;  %p227_p13 = por %p226_p12, %p225_p11 }
  0x24   :  { %p228_p0 = pnand %p227_p13, %p221_p10 }
  0x25   :  { %167 = vmatmul.mubr.msk.bf16.vlgmr.msra.gmra.mxu0 %vm73_vm1, %v179_v3 }
  0xe5   :  { %v111_v9 = vpop.f32.mrf.mxu0 }
  0xe6   :  { %v112_v13 = vadd.f32 %v111_v9, %v55_v10 }
  0xe7   :  { %v168_v11 = vpop.f32.mrf.mxu0 }
  0xe9   :  { %v114_v12 = vpop.f32.mrf.mxu0 }
  0xea   :  { %v115_v14 = vadd.f32 %v114_v12, %v55_v10 }
  0xeb   :  { %v169_v15 = vpop.f32.mrf.mxu0 }
  0xec   :  { %v157_v16 = vpack.c.bf16 %v115_v14, %v112_v13 }
  0xee   :  { %158 = vst [vmem:[#allocation7] sm:$0xff] %v157_v16  }
  0xef   :  { %231 = shalt.err (!%p228_p0)
}
  0xf0   :  { %139 = dma.vmem_to_hbm [thread:$0]  %s134_s25, 128, %s297_s3, [#allocation4], %s247_s15, %s247_s15, %s248_s16  }
  0xf1   :  { %244 = dma.done.wait [#allocation4], 128  }
  0xf2   :  { %245 = vsyncadd [#allocation4], 4294967168 }
  0xf3   :  { %143 = vsyncpa [#allocation3], 1 }
  0xf4   :  { %144 = vsyncpa [#allocation6], 1 }
  0xf5   :  { %145 = vsyncpa [#allocation4], 1 }

</bundles_post_ra>
